<compile_context>
chip_gen: v7x
topology: tpu7x:2x2x1
jax: 0.10.0
libtpu: 0.0.40
codegen_flags: <defaults>
</compile_context>

<pallas_src>
import jax
import jax.numpy as jnp
from jax.experimental import pallas as pl
from jax.experimental.pallas import tpu as pltpu


def _backbone_kernel(logits_s_ref, logits_t_ref, labels_ref, idx_ref,
                     token_s_ref, token_t_ref,
                     cls_loss_ref, cls_kl_ref, tok_kl_ref,
                     acc_ref):
    step = pl.program_id(0)
    nsteps = pl.num_programs(0)

    @pl.when(step == 0)
    def _init():
        acc_ref[...] = jnp.zeros_like(acc_ref)

    # ---- token KL for this tile of TB batch elements (accumulated over the grid) ----
    ts = token_s_ref[...].astype(jnp.float32)      # (TB, K, C) student tokens
    tt_all = token_t_ref[...].astype(jnp.float32)  # (TB, N, C) teacher tokens
    idx = idx_ref[...]                             # (TB, K, 1) int32 kept indices
    tb, k_rows, _ = ts.shape
    n_rows = tt_all.shape[1]

    # In-kernel gather: batched one-hot (TB,K,N) @ (TB,N,C) on the MXU.
    # Duplicates in idx are fine; out-of-range idx would yield an all-zero row
    # (uniform softmax) instead of erroring like torch.gather.
    col = jax.lax.broadcasted_iota(jnp.int32, (tb, k_rows, n_rows), 2)
    onehot = (col == idx).astype(jnp.float32)                     # (TB, K, N)
    tt = jnp.einsum('bkn,bnc->bkc', onehot, tt_all,
                    preferred_element_type=jnp.float32)           # (TB, K, C)

    # Student: log_softmax only (its probabilities are never needed).
    z_s = ts - jnp.max(ts, axis=-1, keepdims=True)
    logp_s = z_s - jnp.log(jnp.sum(jnp.exp(z_s), axis=-1, keepdims=True))

    # Teacher: single exp pass; exact per-row KL with one divide per row:
    #   KL_row = sum_c e_t*(z_t - logp_s) / s_t - log(s_t)
    z_t = tt - jnp.max(tt, axis=-1, keepdims=True)
    e_t = jnp.exp(z_t)
    s_t = jnp.sum(e_t, axis=-1)                                   # (TB, K)
    num = jnp.sum(e_t * (z_t - logp_s), axis=-1)                  # (TB, K)
    kl_row = num / s_t - jnp.log(s_t)                             # (TB, K)
    acc_ref[...] += jnp.sum(jnp.sum(kl_row, axis=-1, keepdims=True),
                            axis=0, keepdims=True)                # (1, 1)

    # ---- finalize: cls CE + cls KL + batchmean-normalised token KL -------------------
    @pl.when(step == nsteps - 1)
    def _finalize():
        ls = logits_s_ref[...].astype(jnp.float32)   # (B, NC) resident block
        lt = logits_t_ref[...].astype(jnp.float32)   # (B, NC) resident block
        lbl = labels_ref[...]                        # (B, 1) int32
        bsz, nc = ls.shape

        z_cs = ls - jnp.max(ls, axis=-1, keepdims=True)
        logp_cs = z_cs - jnp.log(jnp.sum(jnp.exp(z_cs), axis=-1, keepdims=True))

        # CrossEntropyLoss (mean over batch, integer targets) via one-hot select.
        cls_ids = jax.lax.broadcasted_iota(jnp.int32, (bsz, nc), 1)
        onehot_y = (cls_ids == lbl).astype(jnp.float32)
        nll_row = -jnp.sum(onehot_y * logp_cs, axis=-1, keepdims=True)       # (B, 1)
        cls_loss_ref[...] = jnp.sum(nll_row, axis=0, keepdims=True) / bsz

        # kl_div(log_softmax(s), log_softmax(t), log_target=True, 'batchmean')
        z_ct = lt - jnp.max(lt, axis=-1, keepdims=True)
        e_ct = jnp.exp(z_ct)
        s_ct = jnp.sum(e_ct, axis=-1, keepdims=True)                          # (B, 1)
        klc_row = (jnp.sum(e_ct * (z_ct - logp_cs), axis=-1, keepdims=True)
                   / s_ct - jnp.log(s_ct))                                    # (B, 1)
        cls_kl_ref[...] = jnp.sum(klc_row, axis=0, keepdims=True) / bsz

        # batchmean over the GLOBAL row count B*K for the token KL.
        tok_kl_ref[...] = acc_ref[...] / (bsz * k_rows)


def _choose_tile_batch(B, K, N, C, token_itemsize, budget_bytes=8 << 20, cap=16):
    """Largest divisor of B whose double-buffered token tiles fit a conservative
    VMEM budget (safe across v5e/v6e/v7x scoped limits)."""
    per_elem = (K * C + N * C) * token_itemsize + K * 4   # tokens + idx per element
    tb_max = max(1, budget_bytes // (2 * per_elem))       # 2x: double buffering
    tb_max = int(min(tb_max, B, cap))
    for tb in range(tb_max, 0, -1):
        if B % tb == 0:
            return tb
    return 1


def backbone_losses(logits_s, token_s, logits_t, token_t, kept_idx, labels):
    """Returns (cls_loss, cls_kl_loss, token_kl_loss) from one fused Pallas call."""
    B, NC = logits_s.shape
    Bs, K, C = token_s.shape
    Bt, N, Ct = token_t.shape
    assert Bs == B and Bt == B and Ct == C

    labels2d = labels.reshape(B, 1).astype(jnp.int32)
    idx3d = kept_idx.reshape(B, K, 1).astype(jnp.int32)

    tok_bytes = jnp.dtype(token_s.dtype).itemsize
    TB = _choose_tile_batch(B, K, N, C, tok_bytes)

    # Explicit VMEM budget from the actual tile sizes (+ headroom for compiler temps).
    token_stream = 2 * TB * ((K * C + N * C) * tok_bytes + K * 4)
    resident = 2 * 2 * B * NC * 4 + 2 * B * 4
    vmem_limit = int(min(max(token_stream + resident + (8 << 20), 16 << 20), 48 << 20))

    cls_loss, cls_kl, tok_kl = pl.pallas_call(
        _backbone_kernel,
        grid=(B // TB,),
        in_specs=[
            pl.BlockSpec((B, NC), lambda i: (0, 0)),          # logits_s (resident)
            pl.BlockSpec((B, NC), lambda i: (0, 0)),          # logits_t (resident)
            pl.BlockSpec((B, 1), lambda i: (0, 0)),           # labels   (resident)
            pl.BlockSpec((TB, K, 1), lambda i: (i, 0, 0)),    # kept idx, TB elems/step
            pl.BlockSpec((TB, K, C), lambda i: (i, 0, 0)),    # student tokens
            pl.BlockSpec((TB, N, C), lambda i: (i, 0, 0)),    # teacher tokens
        ],
        out_specs=[
            pl.BlockSpec((1, 1), lambda i: (0, 0)),
            pl.BlockSpec((1, 1), lambda i: (0, 0)),
            pl.BlockSpec((1, 1), lambda i: (0, 0)),
        ],
        out_shape=[
            jax.ShapeDtypeStruct((1, 1), jnp.float32),
            jax.ShapeDtypeStruct((1, 1), jnp.float32),
            jax.ShapeDtypeStruct((1, 1), jnp.float32),
        ],
        scratch_shapes=[pltpu.VMEM((1, 1), jnp.float32)],
        compiler_params=pltpu.CompilerParams(
            dimension_semantics=("arbitrary",),   # batch-tile axis is a reduction
            vmem_limit_bytes=vmem_limit),
    )(logits_s, logits_t, labels2d, idx3d, token_s, token_t)
    return cls_loss[0, 0], cls_kl[0, 0], tok_kl[0, 0]


@jax.jit
def _backbone_forward(logits_s, token_s, logits_t, token_t, kept_idx, labels):
    cls_loss, cls_kl, tok_kl = backbone_losses(
        logits_s, token_s, logits_t, token_t, kept_idx, labels)
    return cls_loss + cls_kl + tok_kl, cls_loss, cls_kl, tok_kl


class BackboneLoss:
    """JAX/Pallas port of BackboneLoss (mixup == 0, patch_score_threshold is None)."""

    def __init__(self, patch_score_threshold=None):
        # TODO(synk): SoftTargetCrossEntropy (mixup > 0) and the patch_score_threshold
        # flatten-index branch of the original module are not implemented.
        self.patch_score_threshold = patch_score_threshold
        self.count = 1
        self.running_loss = 0.0
        self.running_cls_loss = 0.0
        self.running_token_kl_loss = 0.0
        self.running_token_dist_loss = 0.0

    def __call__(self, logits_s, token_s, logits_t, token_t, kept_token_idx,
                 train_labels, metrics):
        backbone_loss, cls_loss, cls_kl_loss, token_kl_loss = _backbone_forward(
            logits_s, token_s, logits_t, token_t, kept_token_idx[-1], train_labels)

        # Running metrics as device scalars (no .item() host sync per step).
        # Metric-name wiring intentionally mirrors the original PyTorch module
        # (train_token_kl_loss <- cls_kl_loss, train_cls_kl_loss <- token_kl_loss).
        self.running_loss = self.running_loss + backbone_loss
        self.running_cls_loss = self.running_cls_loss + cls_loss
        self.running_token_dist_loss = self.running_token_dist_loss + cls_kl_loss
        self.running_token_kl_loss = self.running_token_kl_loss + token_kl_loss
        metrics['train_backbone_loss'] = self.running_loss / self.count
        metrics['train_cls_loss'] = self.running_cls_loss / self.count
        metrics['train_token_kl_loss'] = self.running_token_dist_loss / self.count
        metrics['train_cls_kl_loss'] = self.running_token_kl_loss / self.count
        self.count += 1
        return backbone_loss


# ---------------------------------------------------------------------------
# Pure-JAX reference (sanity check only).
# ---------------------------------------------------------------------------
def _reference(logits_s, token_s, logits_t, token_t, kept_idx, labels):
    lps = jax.nn.log_softmax(logits_s, axis=-1)
    lpt = jax.nn.log_softmax(logits_t, axis=-1)
    b = logits_s.shape[0]
    cls_loss = -jnp.mean(jnp.take_along_axis(lps, labels[:, None], axis=1))
    cls_kl = jnp.sum(jnp.exp(lpt) * (lpt - lps)) / b
    c = token_t.shape[-1]
    tt = jnp.take_along_axis(token_t, kept_idx[:, :, None], axis=1).reshape(-1, c)
    ts = token_s.reshape(-1, c)
    lts = jax.nn.log_softmax(ts, axis=-1)
    ltt = jax.nn.log_softmax(tt, axis=-1)
    tok_kl = jnp.sum(jnp.exp(ltt) * (ltt - lts)) / ts.shape[0]
    return cls_loss + cls_kl + tok_kl


if __name__ == "__main__":
    key = jax.random.PRNGKey(0)
    k1, k2, k3, k4, k5, k6, k7 = jax.random.split(key, 7)

    B, NUM_CLASSES = 2, 16      # classification logits
    N, K, C = 16, 8, 32         # teacher tokens, kept tokens, token channels

    logits_s = jax.random.normal(k1, (B, NUM_CLASSES), jnp.float32)
    logits_t = jax.random.normal(k2, (B, NUM_CLASSES), jnp.float32)
    token_s = jax.random.normal(k3, (B, K, C), jnp.float32)
    token_t = jax.random.normal(k4, (B, N, C), jnp.float32)
    train_labels = jax.random.randint(k5, (B,), 0, NUM_CLASSES, jnp.int32)
    # kept_token_idx is a list per pruning stage; only the last entry is used.
    kept_b0 = jax.random.permutation(k6, jnp.arange(N, dtype=jnp.int32))[:K]
    kept_b1 = jax.random.permutation(k7, jnp.arange(N, dtype=jnp.int32))[:K]
    kept_token_idx = [jnp.stack([kept_b0, kept_b1], axis=0).astype(jnp.int32)]  # (B, K)

    loss_mod = BackboneLoss()
    metrics = {}
    out = loss_mod(logits_s, token_s, logits_t, token_t, kept_token_idx,
                   train_labels, metrics)
    out = jax.block_until_ready(out)

    ref = _reference(logits_s, token_s, logits_t, token_t, kept_token_idx[-1],
                     train_labels)
    assert jnp.allclose(out, ref, rtol=1e-5, atol=1e-5), (out, ref)

    print("KERNEL_OK")
</pallas_src>

<mosaic_0001>
module attributes {stable_mosaic.version = 11 : i64} {
  func.func @_backbone_kernel(%arg0: i32, %arg1: memref<2x16xf32, #tpu.memory_space<vmem>>, %arg2: memref<2x16xf32, #tpu.memory_space<vmem>>, %arg3: memref<2x1xi32, #tpu.memory_space<vmem>>, %arg4: memref<2x8x1xi32, #tpu.memory_space<vmem>>, %arg5: memref<2x8x32xf32, #tpu.memory_space<vmem>>, %arg6: memref<2x16x32xf32, #tpu.memory_space<vmem>>, %arg7: memref<1x1xf32, #tpu.memory_space<vmem>>, %arg8: memref<1x1xf32, #tpu.memory_space<vmem>>, %arg9: memref<1x1xf32, #tpu.memory_space<vmem>>, %arg10: memref<1x1xf32, #tpu.memory_space<vmem>>) attributes {dimension_semantics = [#tpu.dimension_semantics<arbitrary>], iteration_bounds = array<i64: 1>, scalar_prefetch = 0 : i64, scratch_operands = 1 : i64, tpu.core_type = #tpu.core_type<tc>, window_params = [{pipeline_mode = #tpu.pipeline_mode<synchronous>, transform_indices = @transform_0, window_bounds = array<i64: 2, 16>}, {pipeline_mode = #tpu.pipeline_mode<synchronous>, transform_indices = @transform_1, window_bounds = array<i64: 2, 16>}, {pipeline_mode = #tpu.pipeline_mode<synchronous>, transform_indices = @transform_2, window_bounds = array<i64: 2, 1>}, {transform_indices = @transform_3, window_bounds = array<i64: 2, 8, 1>}, {transform_indices = @transform_4, window_bounds = array<i64: 2, 8, 32>}, {transform_indices = @transform_5, window_bounds = array<i64: 2, 16, 32>}, {pipeline_mode = #tpu.pipeline_mode<synchronous>, transform_indices = @transform_6, window_bounds = array<i64: 1, 1>}, {pipeline_mode = #tpu.pipeline_mode<synchronous>, transform_indices = @transform_7, window_bounds = array<i64: 1, 1>}, {pipeline_mode = #tpu.pipeline_mode<synchronous>, transform_indices = @transform_8, window_bounds = array<i64: 1, 1>}]} {
    %c0_i32 = arith.constant 0 : i32
    %0 = arith.cmpi eq, %arg0, %c0_i32 : i32
    %1 = arith.extui %0 : i1 to i32
    %c0_i32_0 = arith.constant 0 : i32
    %2 = arith.cmpi ne, %1, %c0_i32_0 : i32
    scf.if %2 {
      %cst_22 = arith.constant 0.000000e+00 : f32
      %44 = vector.broadcast %cst_22 : f32 to vector<1x1xf32>
      %c0_23 = arith.constant 0 : index
      %c0_24 = arith.constant 0 : index
      %45 = vector.load %arg10[%c0_23, %c0_24] : memref<1x1xf32, #tpu.memory_space<vmem>>, vector<1x1xf32>
      tpu.vector_store %arg10[%c0_23, %c0_24], %44 {strides = array<i32>} : memref<1x1xf32, #tpu.memory_space<vmem>>, vector<1x1xf32>,
    } else {
    }
    %c0 = arith.constant 0 : index
    %c0_1 = arith.constant 0 : index
    %c0_2 = arith.constant 0 : index
    %3 = vector.load %arg5[%c0, %c0_1, %c0_2] : memref<2x8x32xf32, #tpu.memory_space<vmem>>, vector<2x8x32xf32>
    %c0_3 = arith.constant 0 : index
    %c0_4 = arith.constant 0 : index
    %c0_5 = arith.constant 0 : index
    %4 = vector.load %arg6[%c0_3, %c0_4, %c0_5] : memref<2x16x32xf32, #tpu.memory_space<vmem>>, vector<2x16x32xf32>
    %c0_6 = arith.constant 0 : index
    %c0_7 = arith.constant 0 : index
    %c0_8 = arith.constant 0 : index
    %5 = vector.load %arg4[%c0_6, %c0_7, %c0_8] : memref<2x8x1xi32, #tpu.memory_space<vmem>>, vector<2x8x1xi32>
    %6 = tpu.iota {dimensions = array<i32: 2>} : vector<2x8x16xi32>
    %7 = vector.broadcast %5 : vector<2x8x1xi32> to vector<2x8x16xi32>
    %8 = arith.cmpi eq, %6, %7 : vector<2x8x16xi32>
    %9 = arith.extui %8 : vector<2x8x16xi1> to vector<2x8x16xi32>
    %10 = arith.sitofp %9 : vector<2x8x16xi32> to vector<2x8x16xf32>
    "tpu.trace_start"() <{level = 10 : i32, message = "bkn,bnc->bkc"}> : () -> ()
    %cst = arith.constant dense<0.000000e+00> : vector<2x8x32xf32>
    %11 = tpu.matmul %10, %4, %cst {dimension_numbers = #tpu.dot_dimension_numbers<[2], [1], [1], [2], [0, 0, 0, 1, 1, 2], [0], [0]>} : vector<2x8x16xf32>, vector<2x16x32xf32>, vector<2x8x32xf32> -> vector<2x8x32xf32>
    "tpu.trace_stop"() : () -> ()
    %cst_9 = arith.constant dense<0xFF800000> : vector<2x8xf32>
    %12 = vector.multi_reduction <maximumf>, %3, %cst_9 [2] : vector<2x8x32xf32> to vector<2x8xf32>
    %13 = vector.shape_cast %12 : vector<2x8xf32> to vector<2x8x1xf32>
    %14 = vector.broadcast %13 : vector<2x8x1xf32> to vector<2x8x32xf32>
    %15 = arith.subf %3, %14 : vector<2x8x32xf32>
    %16 = math.exp %15 : vector<2x8x32xf32>
    %cst_10 = arith.constant dense<0.000000e+00> : vector<2x8xf32>
    %17 = vector.multi_reduction <add>, %16, %cst_10 [2] : vector<2x8x32xf32> to vector<2x8xf32>
    %18 = vector.shape_cast %17 : vector<2x8xf32> to vector<2x8x1xf32>
    %19 = math.log %18 : vector<2x8x1xf32>
    %20 = vector.broadcast %19 : vector<2x8x1xf32> to vector<2x8x32xf32>
    %21 = arith.subf %15, %20 : vector<2x8x32xf32>
    %cst_11 = arith.constant dense<0xFF800000> : vector<2x8xf32>
    %22 = vector.multi_reduction <maximumf>, %11, %cst_11 [2] : vector<2x8x32xf32> to vector<2x8xf32>
    %23 = vector.shape_cast %22 : vector<2x8xf32> to vector<2x8x1xf32>
    %24 = vector.broadcast %23 : vector<2x8x1xf32> to vector<2x8x32xf32>
    %25 = arith.subf %11, %24 : vector<2x8x32xf32>
    %26 = math.exp %25 : vector<2x8x32xf32>
    %cst_12 = arith.constant dense<0.000000e+00> : vector<2x8xf32>
    %27 = vector.multi_reduction <add>, %26, %cst_12 [2] : vector<2x8x32xf32> to vector<2x8xf32>
    %28 = arith.subf %25, %21 : vector<2x8x32xf32>
    %29 = arith.mulf %26, %28 : vector<2x8x32xf32>
    %cst_13 = arith.constant dense<0.000000e+00> : vector<2x8xf32>
    %30 = vector.multi_reduction <add>, %29, %cst_13 [2] : vector<2x8x32xf32> to vector<2x8xf32>
    %31 = arith.divf %30, %27 : vector<2x8xf32>
    %32 = math.log %27 : vector<2x8xf32>
    %33 = arith.subf %31, %32 : vector<2x8xf32>
    %c0_14 = arith.constant 0 : index
    %c0_15 = arith.constant 0 : index
    %34 = vector.load %arg10[%c0_14, %c0_15] : memref<1x1xf32, #tpu.memory_space<vmem>>, vector<1x1xf32>
    %cst_16 = arith.constant dense<0.000000e+00> : vector<2xf32>
    %35 = vector.multi_reduction <add>, %33, %cst_16 [1] : vector<2x8xf32> to vector<2xf32>
    %36 = vector.shape_cast %35 : vector<2xf32> to vector<2x1xf32>
    %cst_17 = arith.constant dense<0.000000e+00> : vector<1xf32>
    %37 = vector.multi_reduction <add>, %36, %cst_17 [0] : vector<2x1xf32> to vector<1xf32>
    %38 = vector.shape_cast %37 : vector<1xf32> to vector<1x1xf32>
    %39 = arith.addf %34, %38 : vector<1x1xf32>
    %c0_18 = arith.constant 0 : index
    %c0_19 = arith.constant 0 : index
    %40 = vector.load %arg10[%c0_18, %c0_19] : memref<1x1xf32, #tpu.memory_space<vmem>>, vector<1x1xf32>
    tpu.vector_store %arg10[%c0_18, %c0_19], %39 {strides = array<i32>} : memref<1x1xf32, #tpu.memory_space<vmem>>, vector<1x1xf32>,
    %c0_i32_20 = arith.constant 0 : i32
    %41 = arith.cmpi eq, %arg0, %c0_i32_20 : i32
    %42 = arith.extui %41 : i1 to i32
    %c0_i32_21 = arith.constant 0 : i32
    %43 = arith.cmpi ne, %42, %c0_i32_21 : i32
    scf.if %43 {
      %c0_22 = arith.constant 0 : index
      %c0_23 = arith.constant 0 : index
      %44 = vector.load %arg1[%c0_22, %c0_23] : memref<2x16xf32, #tpu.memory_space<vmem>>, vector<2x16xf32>
      %c0_24 = arith.constant 0 : index
      %c0_25 = arith.constant 0 : index
      %45 = vector.load %arg2[%c0_24, %c0_25] : memref<2x16xf32, #tpu.memory_space<vmem>>, vector<2x16xf32>
      %c0_26 = arith.constant 0 : index
      %c0_27 = arith.constant 0 : index
      %46 = vector.load %arg3[%c0_26, %c0_27] : memref<2x1xi32, #tpu.memory_space<vmem>>, vector<2x1xi32>
      %cst_28 = arith.constant dense<0xFF800000> : vector<2xf32>
      %47 = vector.multi_reduction <maximumf>, %44, %cst_28 [1] : vector<2x16xf32> to vector<2xf32>
      %48 = vector.shape_cast %47 : vector<2xf32> to vector<2x1xf32>
      %49 = vector.broadcast %48 : vector<2x1xf32> to vector<2x16xf32>
      %50 = arith.subf %44, %49 : vector<2x16xf32>
      %51 = math.exp %50 : vector<2x16xf32>
      %cst_29 = arith.constant dense<0.000000e+00> : vector<2xf32>
      %52 = vector.multi_reduction <add>, %51, %cst_29 [1] : vector<2x16xf32> to vector<2xf32>
      %53 = vector.shape_cast %52 : vector<2xf32> to vector<2x1xf32>
      %54 = math.log %53 : vector<2x1xf32>
      %55 = vector.broadcast %54 : vector<2x1xf32> to vector<2x16xf32>
      %56 = arith.subf %50, %55 : vector<2x16xf32>
      %57 = tpu.iota {dimensions = array<i32: 1>} : vector<2x16xi32>
      %58 = vector.broadcast %46 : vector<2x1xi32> to vector<2x16xi32>
      %59 = arith.cmpi eq, %57, %58 : vector<2x16xi32>
      %60 = arith.extui %59 : vector<2x16xi1> to vector<2x16xi32>
      %61 = arith.sitofp %60 : vector<2x16xi32> to vector<2x16xf32>
      %62 = arith.mulf %61, %56 : vector<2x16xf32>
      %cst_30 = arith.constant dense<0.000000e+00> : vector<2xf32>
      %63 = vector.multi_reduction <add>, %62, %cst_30 [1] : vector<2x16xf32> to vector<2xf32>
      %64 = vector.shape_cast %63 : vector<2xf32> to vector<2x1xf32>
      %cst_31 = arith.constant 0.000000e+00 : f32
      %65 = vector.broadcast %cst_31 : f32 to vector<2x1xf32>
      %66 = arith.subf %65, %64 : vector<2x1xf32>
      %cst_32 = arith.constant dense<0.000000e+00> : vector<1xf32>
      %67 = vector.multi_reduction <add>, %66, %cst_32 [0] : vector<2x1xf32> to vector<1xf32>
      %68 = vector.shape_cast %67 : vector<1xf32> to vector<1x1xf32>
      %cst_33 = arith.constant 2.000000e+00 : f32
      %69 = vector.broadcast %cst_33 : f32 to vector<1x1xf32>
      %70 = arith.divf %68, %69 : vector<1x1xf32>
      %c0_34 = arith.constant 0 : index
      %c0_35 = arith.constant 0 : index
      %71 = vector.load %arg7[%c0_34, %c0_35] : memref<1x1xf32, #tpu.memory_space<vmem>>, vector<1x1xf32>
      tpu.vector_store %arg7[%c0_34, %c0_35], %70 {strides = array<i32>} : memref<1x1xf32, #tpu.memory_space<vmem>>, vector<1x1xf32>,
      %cst_36 = arith.constant dense<0xFF800000> : vector<2xf32>
      %72 = vector.multi_reduction <maximumf>, %45, %cst_36 [1] : vector<2x16xf32> to vector<2xf32>
      %73 = vector.shape_cast %72 : vector<2xf32> to vector<2x1xf32>
      %74 = vector.broadcast %73 : vector<2x1xf32> to vector<2x16xf32>
      %75 = arith.subf %45, %74 : vector<2x16xf32>
      %76 = math.exp %75 : vector<2x16xf32>
      %cst_37 = arith.constant dense<0.000000e+00> : vector<2xf32>
      %77 = vector.multi_reduction <add>, %76, %cst_37 [1] : vector<2x16xf32> to vector<2xf32>
      %78 = vector.shape_cast %77 : vector<2xf32> to vector<2x1xf32>
      %79 = arith.subf %75, %56 : vector<2x16xf32>
      %80 = arith.mulf %76, %79 : vector<2x16xf32>
      %cst_38 = arith.constant dense<0.000000e+00> : vector<2xf32>
      %81 = vector.multi_reduction <add>, %80, %cst_38 [1] : vector<2x16xf32> to vector<2xf32>
      %82 = vector.shape_cast %81 : vector<2xf32> to vector<2x1xf32>
      %83 = arith.divf %82, %78 : vector<2x1xf32>
      %84 = math.log %78 : vector<2x1xf32>
      %85 = arith.subf %83, %84 : vector<2x1xf32>
      %cst_39 = arith.constant dense<0.000000e+00> : vector<1xf32>
      %86 = vector.multi_reduction <add>, %85, %cst_39 [0] : vector<2x1xf32> to vector<1xf32>
      %87 = vector.shape_cast %86 : vector<1xf32> to vector<1x1xf32>
      %cst_40 = arith.constant 2.000000e+00 : f32
      %88 = vector.broadcast %cst_40 : f32 to vector<1x1xf32>
      %89 = arith.divf %87, %88 : vector<1x1xf32>
      %c0_41 = arith.constant 0 : index
      %c0_42 = arith.constant 0 : index
      %90 = vector.load %arg8[%c0_41, %c0_42] : memref<1x1xf32, #tpu.memory_space<vmem>>, vector<1x1xf32>
      tpu.vector_store %arg8[%c0_41, %c0_42], %89 {strides = array<i32>} : memref<1x1xf32, #tpu.memory_space<vmem>>, vector<1x1xf32>,
      %c0_43 = arith.constant 0 : index
      %c0_44 = arith.constant 0 : index
      %91 = vector.load %arg10[%c0_43, %c0_44] : memref<1x1xf32, #tpu.memory_space<vmem>>, vector<1x1xf32>
      %cst_45 = arith.constant 1.600000e+01 : f32
      %92 = vector.broadcast %cst_45 : f32 to vector<1x1xf32>
      %93 = arith.divf %91, %92 : vector<1x1xf32>
      %c0_46 = arith.constant 0 : index
      %c0_47 = arith.constant 0 : index
      %94 = vector.load %arg9[%c0_46, %c0_47] : memref<1x1xf32, #tpu.memory_space<vmem>>, vector<1x1xf32>
      tpu.vector_store %arg9[%c0_46, %c0_47], %93 {strides = array<i32>} : memref<1x1xf32, #tpu.memory_space<vmem>>, vector<1x1xf32>,
    } else {
    }
    return
  }
  func.func @transform_0(%arg0: i32) -> (i32, i32) {
    %c0_i32 = arith.constant 0 : i32
    %c0_i32_0 = arith.constant 0 : i32
    %c0_i32_1 = arith.constant 0 : i32
    return %c0_i32, %c0_i32_0 : i32, i32
  }
  func.func @transform_1(%arg0: i32) -> (i32, i32) {
    %c0_i32 = arith.constant 0 : i32
    %c0_i32_0 = arith.constant 0 : i32
    %c0_i32_1 = arith.constant 0 : i32
    return %c0_i32, %c0_i32_0 : i32, i32
  }
  func.func @transform_2(%arg0: i32) -> (i32, i32) {
    %c0_i32 = arith.constant 0 : i32
    %c0_i32_0 = arith.constant 0 : i32
    %c0_i32_1 = arith.constant 0 : i32
    return %c0_i32, %c0_i32_0 : i32, i32
  }
  func.func @transform_3(%arg0: i32) -> (i32, i32, i32) {
    %c0_i32 = arith.constant 0 : i32
    %c0_i32_0 = arith.constant 0 : i32
    %c0_i32_1 = arith.constant 0 : i32
    return %arg0, %c0_i32, %c0_i32_0 : i32, i32, i32
  }
  func.func @transform_4(%arg0: i32) -> (i32, i32, i32) {
    %c0_i32 = arith.constant 0 : i32
    %c0_i32_0 = arith.constant 0 : i32
    %c0_i32_1 = arith.constant 0 : i32
    return %arg0, %c0_i32, %c0_i32_0 : i32, i32, i32
  }
  func.func @transform_5(%arg0: i32) -> (i32, i32, i32) {
    %c0_i32 = arith.constant 0 : i32
    %c0_i32_0 = arith.constant 0 : i32
    %c0_i32_1 = arith.constant 0 : i32
    return %arg0, %c0_i32, %c0_i32_0 : i32, i32, i32
  }
  func.func @transform_6(%arg0: i32) -> (i32, i32) {
    %c0_i32 = arith.constant 0 : i32
    %c0_i32_0 = arith.constant 0 : i32
    %c0_i32_1 = arith.constant 0 : i32
    return %c0_i32, %c0_i32_0 : i32, i32
  }
  func.func @transform_7(%arg0: i32) -> (i32, i32) {
    %c0_i32 = arith.constant 0 : i32
    %c0_i32_0 = arith.constant 0 : i32
    %c0_i32_1 = arith.constant 0 : i32
    return %c0_i32, %c0_i32_0 : i32, i32
  }
  func.func @transform_8(%arg0: i32) -> (i32, i32) {
    %c0_i32 = arith.constant 0 : i32
    %c0_i32_0 = arith.constant 0 : i32
    %c0_i32_1 = arith.constant 0 : i32
    return %c0_i32, %c0_i32_0 : i32, i32
  }
}

</mosaic_0001>

<bundles_post_ra>
// kernel: _backbone_forward.1
= control target key start
LH: loop header
LB: loop body
LE: loop exit
PB: predicated region body
PF: predicated region fallthrough
CT: control target
= control target key end

     0   :  { %14 = vsyncpa [#allocation4], 0  ;;  %s777_s0 = inlined_call_operand.vmem [shape: f32[2,16], index: 0, kind: input, shape index: {}]   ;;  %s778_s1 = inlined_call_operand.vmem [shape: f32[2,16], index: 1, kind: input, shape index: {}]   ;;  %s779_s2 = inlined_call_operand.vmem [shape: s32[2,1], index: 2, kind: input, shape index: {}]   ;;  %s780_s3 = inlined_call_operand.vmem [shape: s32[2,8,1], index: 3, kind: input, shape index: {}]   ;;  %s781_s4 = inlined_call_operand.hbm [shape: f32[2,8,32], index: 4, kind: input, shape index: {}]   ;;  %s782_s5 = inlined_call_operand.vmem [shape: f32[2,16,32], index: 5, kind: input, shape index: {}]   ;;  %s783_s6 = inlined_call_operand.hbm [shape: f32[1,1], index: 6, kind: output, shape index: {0}]   ;;  %s784_s7 = inlined_call_operand.hbm [shape: f32[1,1], index: 7, kind: output, shape index: {1}]   ;;  %s785_s8 = inlined_call_operand.hbm [shape: f32[1,1], index: 8, kind: output, shape index: {2}]  }
   0x1   :  { %15 = vsyncpa [#allocation5], 0 }
   0x2   :  { %16 = vsyncpa [#allocation8], 0  ;;  %s589_s27 = smov [#allocation3]   ;;  %s495_s9 = scalar_lea.hbm %s781_s4, 256 }
   0x3   :  { %s30_s28 = sshll.u32 %s589_s27, 4  ;;  %p496_p0 = scmp.ne.s32.totalorder %s781_s4, %s495_s9  ;;  %s31_s28 = int_to_ptr.vmem [resolvable:$true] %s30_s28 }
   0x4   :  { %p499_p1 = scmp.lt.u32.totalorder %s495_s9, %s781_s4 }
   0x6   :  { %p501_p2 = pnand %p499_p1, %p496_p0 }
   0x8   :  { %504 = shalt.err (!%p501_p2)
}
   0x9   :  { %s505_s14 = scalar_lea.vmem %s31_s28, 256  ;;  %p510_p4 = scmp.lt.s32.totalorder %s31_s28, %s31_s28 }
   0xa   :  { %p506_p3 = scmp.ne.s32.totalorder %s31_s28, %s505_s14  ;;  %p511_p5 = scmp.lt.s32.totalorder %s505_s14, %s505_s14 }
   0xc   :  { %p512_p6 = por %p511_p5, %p510_p4 }
   0xe   :  { %p513_p7 = pnand %p512_p6, %p506_p3 }
  0x10   :  { %516 = shalt.err (!%p513_p7)
}
  0x11   :  { %s590_s15 = smov 128   ;;  %s591_s16 = smov 8  }
  0x12   :  { %36 = dma.hbm_to_vmem [thread:$0]  %s781_s4, 256, %s31_s28, [#allocation4], %s590_s15, %s590_s15, %s591_s16  }
  0x13   :  { %583 = dma.done.wait [#allocation4], 256  }
  0x14   :  { %584 = vsyncadd [#allocation4], 4294967040  ;;  %v592_v0 = vmov 0   ;;  %v593_v1 = vmov 0.0|0.0   ;;  %v54_v2 = vld [vmem:[%s780_s3] sm:$0xff]  ;;  %v51_v4 = vld [vmem:[%s782_s5 + $0x8] sm:$0xff]  ;;  %v56_v15 = vlaneseq }
  0x15   :  { %464 = vset.pattern.permute.xlu0 %v592_v0  ;;  %448 = vmatprep.subr.bf16.mxu0 %v593_v1  ;;  %v50_v3 = vld [vmem:[%s782_s5] sm:$0xff]  ;;  %v52_v5 = vld [vmem:[%s782_s5 + $0x10] sm:$0xff]  ;;  %v53_v6 = vld [vmem:[%s782_s5 + $0x18] sm:$0xff]  ;;  %vm594_vm0 = vmmov 0   ;;  %v595_v9 = vmov 0.0   ;;  %vm217_vm1 = vcmask 261120  }
  0x16   :  { %451 = vmatprep.subr.bf16.mxu1 %v593_v1  ;;  %59 = vperm.xlu0 %464, %v54_v2   ;;  %v55_v7 = vld [vmem:[%s780_s3 + $0x8] sm:$0xff]  ;;  %v449_v8 = vpack.c.bf16 %v51_v4, %v50_v3  ;;  %v452_v10 = vpack.c.bf16 %v53_v6, %v52_v5  ;;  %v679_v16 = vand.u32 127, %v56_v15  ;;  %vm70_vm2 = vcmask 130048   ;;  %v312_v21 = vld [vmem:[%s777_s0] sm:$0x3]  ;;  %s597_s11 = smov [#allocation6]  }
  0x17   :  { %438 = vmatprep.mubr.msk.f32.mxu0 %vm594_vm0, %v595_v9  ;;  %445 = vmatprep.mubr.msk.f32.mxu1 %vm594_vm0, %v595_v9  ;;  %v48_v11 = vld [vmem:[#allocation3] sm:$0xff]  ;;  %v49_v12 = vld [vmem:[#allocation3 + $0x8] sm:$0xff]  ;;  %vm315_vm5 = vcmask 123904   ;;  %vm46_vm6 = vcmask 0   ;;  %vm291_vm7 = vcmask 1041409   ;;  %vm294_vm8 = vcmask 58368  }
  0x18   :  { %450 = vmatpush3.bf16.msra.mxu0 %v449_v8  ;;  %453 = vmatpush3.bf16.msra.mxu1 %v452_v10  ;;  %v218_v13 = vsel %vm217_vm1, %v48_v11, -inf  ;;  %v221_v14 = vsel %vm217_vm1, %v49_v12, -inf  ;;  %v316_v22 = vsel %vm315_vm5, %v312_v21, -inf  ;;  %v313_v39 = vld [vmem:[%s778_s1] sm:$0x3]  ;;  %vm298_vm10 = vcmask 1041408  }
  0x19   :  { %219 = vmax.xlane.f32.xlu1 %v218_v13  ;;  %v349_v40 = vsel %vm315_vm5, %v313_v39, -inf  ;;  %47 = vst.msk [vmem:[#allocation2] sm:$0x1] %vm46_vm6, %v595_v9  ;;  %s387_s12 = sshll.u32 %s597_s11, 4  ;;  %s598_s13 = smov [#allocation9]   ;;  %s723_s12 = int_to_ptr.vmem [resolvable:$true] %s387_s12 }
  0x1a   :  { %62 = vperm.xlu0 %464, %v55_v7   ;;  %s407_s14 = sshll.u32 %s598_s13, 4  ;;  %s725_s14 = int_to_ptr.vmem [resolvable:$true] %s407_s14 }
  0x1d   :  { %222 = vmax.xlane.f32.xlu1 %v221_v14 }
  0x21   :  { %317 = vmax.xlane.f32.xlu1 %v316_v22 }
  0x95   :  { %v60_v17 = vpop.permute.xlu0 %59 }
  0x96   :  { %vm64_vm3 = vcmp.eq.s32.totalorder %v679_v16, %v60_v17 }
  0x97   :  { %v423_v18 = vsel %vm64_vm3, 1.0, %v595_v9 }
  0x98   :  { %439 = vmatmul.mubr.msk.f32.vlgmr.msra.gmra.mrb[0].mxu0 %vm70_vm2, %v423_v18 }
  0x99   :  { %v63_v19 = vpop.permute.xlu0 %62 }
  0x9a   :  { %vm65_vm4 = vcmp.eq.s32.totalorder %v679_v16, %v63_v19 }
  0x9b   :  { %v424_v20 = vsel %vm65_vm4, 1.0, %v595_v9 }
  0x9c   :  { %446 = vmatmul.mubr.msk.f32.vlgmr.msra.gmra.mrb[0].mxu1 %vm70_vm2, %v424_v20  ;;  %v284_v20 = vshrl.u32 %v56_v15, 7 }
  0xa6   :  { %v220_v23 = vpop.xlane.xlu1 %219 }
  0xa7   :  { %v224_v24 = vsub.f32 %v48_v11, %v220_v23 }
  0xa9   :  { %v226_v26 = vmul.f32 1.442695, %v224_v24 }
  0xaa   :  { %v223_v25 = vpop.xlane.xlu1 %222 }
  0xab   :  { %v225_v27 = vsub.f32 %v49_v12, %v223_v25  ;;  %465 = vpow2.f32 %v226_v26  ;;  %v314_v12 = vld [vmem:[%s779_s2] sm:$0x3]  ;;  %s596_s2 = smov [#allocation7]  }
  0xac   :  { %s397_s10 = sshll.u32 %s596_s2, 4  ;;  %s398_s10 = int_to_ptr.vmem [resolvable:$true] %s397_s10 }
  0xad   :  { %v228_v28 = vmul.f32 1.442695, %v225_v27  ;;  %s517_s15 = scalar_lea.vmem %s398_s10, 16  ;;  %s521_s16 = scalar_lea.vmem %s398_s10, 32 }
  0xae   :  { %v318_v41 = vpop.xlane.xlu1 %317  ;;  %p518_p8 = scmp.ne.s32.totalorder %s398_s10, %s517_s15  ;;  %p522_p9 = scmp.lt.s32.totalorder %s398_s10, %s398_s10 }
  0xaf   :  { %467 = vpow2.f32 %v228_v28  ;;  %v697_v45 = vsub.f32 %v312_v21, %v318_v41  ;;  %p523_p10 = scmp.lt.s32.totalorder %s521_s16, %s517_s15 }
  0xb1   :  { %v320_v48 = vmul.f32 1.442695, %v697_v45  ;;  %p524_p11 = por %p523_p10, %p522_p9 }
  0xb3   :  { %p525_p12 = pnand %p524_p11, %p518_p8 }
  0xb5   :  { %v466_v32 = vpop.eup %465 }
  0xb6   :  { %v230_v36 = vsel %vm217_vm1, %v466_v32, 0.0 }
  0xb9   :  { %v468_v37 = vpop.eup %467 }
  0xba   :  { %v233_v38 = vsel %vm217_vm1, %v468_v37, 0.0 }
 0x16b   :  { %v140_v29 = vpop.f32.mrb[0].mxu0 }
 0x16c   :  { %v440_v30 = vpop.f32.mrb[1].mxu0  ;;  %v242_v31 = vsel %vm217_vm1, %v140_v29, -inf }
 0x16d   :  { %243 = vmax.xlane.f32.xlu0 %v242_v31 }
 0x16f   :  { %v213_v33 = vpop.f32.mrb[0].mxu1 }
 0x170   :  { %v447_v34 = vpop.f32.mrb[1].mxu1  ;;  %v245_v35 = vsel %vm217_vm1, %v213_v33, -inf }
 0x171   :  { %246 = vmax.xlane.f32.xlu1 %v245_v35 }
 0x175   :  { %231 = vadd.xlane.f32.xlu1 %v230_v36 }
 0x179   :  { %234 = vadd.xlane.f32.xlu1 %v233_v38 }
 0x17d   :  { %350 = vmax.xlane.f32.xlu1 %v349_v40 }
 0x1fa   :  { %v244_v42 = vpop.xlane.xlu0 %243 }
 0x1fb   :  { %v248_v43 = vsub.f32 %v140_v29, %v244_v42 }
 0x1fd   :  { %v250_v44 = vmul.f32 1.442695, %v248_v43 }
 0x1fe   :  { %v247_v46 = vpop.xlane.xlu1 %246 }
 0x1ff   :  { %469 = vpow2.f32 %v250_v44  ;;  %v249_v47 = vsub.f32 %v213_v33, %v247_v46 }
 0x201   :  { %v252_v49 = vmul.f32 1.442695, %v249_v47 }
 0x202   :  { %v232_v50 = vpop.xlane.xlu1 %231 }
 0x203   :  { %471 = vpow2.f32 %v252_v49 }
 0x204   :  { %473 = vlog2.f32 %v232_v50 }
 0x205   :  { %475 = vpow2.f32 %v320_v48 }
 0x206   :  { %v235_v51 = vpop.xlane.xlu1 %234 }
 0x207   :  { %477 = vlog2.f32 %v235_v51 }
 0x209   :  { %v470_v52 = vpop.eup %469 }
 0x20a   :  { %v254_v53 = vsel %vm217_vm1, %v470_v52, 0.0  ;;  %v351_v2 = vpop.xlane.xlu1 %350 }
 0x20b   :  { %255 = vadd.xlane.f32.xlu1 %v254_v53  ;;  %v352_v4 = vsub.f32 %v313_v39, %v351_v2 }
 0x20d   :  { %v472_v54 = vpop.eup %471  ;;  %v353_v7 = vmul.f32 1.442695, %v352_v4 }
 0x20e   :  { %v474_v55 = vpop.eup %473  ;;  %v257_v56 = vsel %vm217_vm1, %v472_v54, 0.0 }
 0x20f   :  { %v476_v57 = vpop.eup %475  ;;  %v237_v58 = vmul.f32 0.6931472, %v474_v55  ;;  %258 = vadd.xlane.f32.xlu1 %v257_v56  ;;  %479 = vpow2.f32 %v353_v7 }
 0x210   :  { %v322_v62 = vsel %vm315_vm5, %v476_v57, 0.0 }
 0x211   :  { %v478_v59 = vpop.eup %477  ;;  %v240_v60 = vsub.f32 %v224_v24, %v237_v58 }
 0x212   :  { %v239_v61 = vmul.f32 0.6931472, %v478_v59 }
 0x213   :  { %323 = vadd.xlane.f32.xlu1 %v322_v62  ;;  %v260_v63 = vsub.f32 %v248_v43, %v240_v60 }
 0x214   :  { %v241_v0 = vsub.f32 %v225_v27, %v239_v61  ;;  %v285_v27 = vsub.s32 %v679_v16, %v284_v20  ;;  %v280_v61 = vld [vmem:[#allocation2] sm:$0x1] }
 0x215   :  { %v262_v1 = vmul.f32 %v470_v52, %v260_v63 }
 0x216   :  { %v261_v3 = vsub.f32 %v249_v47, %v241_v0 }
 0x217   :  { %v264_v5 = vsel %vm217_vm1, %v262_v1, 0.0 }
 0x218   :  { %265 = vadd.xlane.f32.xlu0 %v264_v5  ;;  %v263_v6 = vmul.f32 %v472_v54, %v261_v3 }
 0x219   :  { %v480_v10 = vpop.eup %479 }
 0x21a   :  { %v267_v8 = vsel %vm217_vm1, %v263_v6, 0.0  ;;  %v355_v11 = vsel %vm315_vm5, %v480_v10, 0.0 }
 0x21b   :  { %268 = vadd.xlane.f32.xlu1 %v267_v8 }
 0x21f   :  { %356 = vadd.xlane.f32.xlu1 %v355_v11 }
 0x22e   :  { %329 = vperm.xlu0 %464, %v314_v12  }
 0x298   :  { %v256_v13 = vpop.xlane.xlu1 %255 }
 0x299   :  { %481 = vrcp.f32 %v256_v13 }
 0x29a   :  { %483 = vlog2.f32 %v256_v13 }
 0x29c   :  { %v259_v14 = vpop.xlane.xlu1 %258 }
 0x29d   :  { %485 = vrcp.f32 %v259_v14 }
 0x29e   :  { %487 = vlog2.f32 %v259_v14 }
 0x2a0   :  { %v324_v17 = vpop.xlane.xlu1 %323 }
 0x2a1   :  { %489 = vlog2.f32 %v324_v17 }
 0x2a3   :  { %v482_v18 = vpop.eup %481 }
 0x2a4   :  { %v484_v19 = vpop.eup %483 }
 0x2a5   :  { %v266_v21 = vpop.xlane.xlu0 %265  ;;  %v275_v22 = vmul.f32 0.6931472, %v484_v19 }
 0x2a6   :  { %v271_v23 = vmul.f32 %v482_v18, %v266_v21 }
 0x2a7   :  { %v486_v24 = vpop.eup %485 }
 0x2a8   :  { %v488_v25 = vpop.eup %487  ;;  %v269_v26 = vpop.xlane.xlu1 %268  ;;  %v278_v28 = vsub.f32 %v271_v23, %v275_v22 }
 0x2a9   :  { %v277_v29 = vmul.f32 0.6931472, %v488_v25  ;;  %v273_v30 = vmul.f32 %v486_v24, %v269_v26 }
 0x2aa   :  { %v286_v34 = vrot.slane %v278_v28, %v285_v27 }
 0x2ab   :  { %v490_v31 = vpop.eup %489  ;;  %v279_v32 = vsub.f32 %v273_v30, %v277_v29 }
 0x2ac   :  { %v326_v33 = vmul.f32 0.6931472, %v490_v31  ;;  %v357_v46 = vpop.xlane.xlu1 %356 }
 0x2ad   :  { %v290_v35 = vrot.slane %v279_v32, %v285_v27  ;;  %v330_v36 = vpop.permute.xlu0 %329  ;;  %491 = vlog2.f32 %v357_v46 }
 0x2ae   :  { %v327_v15 = vsub.f32 %v697_v45, %v326_v33  ;;  %vm331_vm9 = vcmp.eq.s32.totalorder %v679_v16, %v330_v36  ;;  %493 = vrcp.f32 %v357_v46 }
 0x2af   :  { %v292_v37 = vsel %vm291_vm7, %v290_v35, %v286_v34  ;;  %v427_v40 = vsel %vm331_vm9, 1.0, %v595_v9 }
 0x2b0   :  { %v295_v38 = vsel %vm294_vm8, %v292_v37, 0.0  ;;  %v358_v39 = vsub.f32 %v352_v4, %v327_v15  ;;  %v334_v43 = vmul.f32 %v427_v40, %v327_v15 }
 0x2b1   :  { %296 = vadd.xlane.f32.xlu1 %v295_v38 }
 0x2b2   :  { %v359_v41 = vmul.f32 %v480_v10, %v358_v39  ;;  %v335_v44 = vsel %vm315_vm5, %v334_v43, 0.0 }
 0x2b4   :  { %v360_v42 = vsel %vm315_vm5, %v359_v41, 0.0 }
 0x2b5   :  { %361 = vadd.xlane.f32.xlu1 %v360_v42 }
 0x2b7   :  { %v492_v47 = vpop.eup %491 }
 0x2b8   :  { %v494_v49 = vpop.eup %493  ;;  %v366_v51 = vmul.f32 0.6931472, %v492_v47 }
 0x2b9   :  { %336 = vadd.xlane.f32.xlu1 %v335_v44 }
 0x33e   :  { %v297_v45 = vpop.xlane.xlu1 %296 }
 0x33f   :  { %v299_v16 = vsel %vm298_vm10, %v297_v45, 0.0 }
 0x340   :  { %v300_v48 = vrot.slane %v299_v16, 4 }
 0x342   :  { %v301_v9 = vadd.f32 %v300_v48, %v299_v16  ;;  %v362_v50 = vpop.xlane.xlu1 %361 }
 0x343   :  { %v364_v52 = vmul.f32 %v494_v49, %v362_v50 }
 0x344   :  { %v302_v53 = vrot.slane %v301_v9, 2 }
 0x345   :  { %v367_v54 = vsub.f32 %v364_v52, %v366_v51 }
 0x346   :  { %v303_v55 = vadd.f32 %v302_v53, %v301_v9  ;;  %v337_v56 = vpop.xlane.xlu1 %336 }
 0x347   :  { %v368_v57 = vsel %vm298_vm10, %v367_v54, 0.0  ;;  %v338_v58 = vsub.f32 0.0, %v337_v56 }
 0x348   :  { %v304_v59 = vrot.slane %v303_v55, 1  ;;  %v369_v60 = vrot.slane %v368_v57, 4 }
 0x349   :  { %v339_v62 = vsel %vm298_vm10, %v338_v58, 0.0 }
 0x34a   :  { %v305_v63 = vadd.f32 %v304_v59, %v303_v55  ;;  %v370_v0 = vadd.f32 %v369_v60, %v368_v57  ;;  %v340_v1 = vrot.slane %v339_v62, 4 }
 0x34c   :  { %v306_v2 = vadd.f32 %v305_v63, %v280_v61  ;;  %v371_v3 = vrot.slane %v370_v0, 2  ;;  %v341_v4 = vadd.f32 %v340_v1, %v339_v62 }
 0x34e   :  { %308 = vst.msk [vmem:[#allocation2] sm:$0x1] %vm46_vm6, %v306_v2  ;;  %v372_v5 = vadd.f32 %v371_v3, %v370_v0  ;;  %v342_v6 = vrot.slane %v341_v4, 2 }
 0x350   :  { %v343_v7 = vadd.f32 %v342_v6, %v341_v4  ;;  %v373_v8 = vrot.slane %v372_v5, 1 }
 0x352   :  { %v344_v10 = vrot.slane %v343_v7, 1  ;;  %v374_v11 = vadd.f32 %v373_v8, %v372_v5 }
 0x354   :  { %v375_v12 = vmul.f32 0.5, %v374_v11  ;;  %v345_v13 = vadd.f32 %v344_v10, %v343_v7 }
 0x355   :  { %v377_v14 = vld [vmem:[#allocation2] sm:$0x1] }
 0x356   :  { %376 = vst.msk [vmem:[#allocation7] sm:$0x1] %vm46_vm6, %v375_v12  ;;  %v347_v17 = vmul.f32 0.5, %v345_v13  ;;  %v379_v18 = vmul.f32 0.0625, %v377_v14 }
 0x357   :  { %528 = shalt.err (!%p525_p12)
}
 0x358   :  { %s529_s19 = scalar_lea.hbm %s784_s7, 16 }
 0x359   :  { %p530_p13 = scmp.ne.s32.totalorder %s784_s7, %s529_s19  ;;  %p533_p0 = scmp.lt.u32.totalorder %s529_s19, %s784_s7 }
 0x35b   :  { %p535_p1 = pnand %p533_p0, %p530_p13 }
 0x35d   :  { %538 = shalt.err (!%p535_p1)
}
 0x35e   :  { %400 = dma.vmem_to_hbm [thread:$0]  %s398_s10, 16, %s784_s7, [#allocation8]   ;;  %348 = vst.msk [vmem:[#allocation6] sm:$0x1] %vm46_vm6, %v347_v17  ;;  %380 = vst.msk [vmem:[#allocation9] sm:$0x1] %vm46_vm6, %v379_v18 }
 0x35f   :  { %s539_s25 = scalar_lea.vmem %s723_s12, 16  ;;  %s543_s26 = scalar_lea.vmem %s723_s12, 32 }
 0x360   :  { %p540_p2 = scmp.ne.s32.totalorder %s723_s12, %s539_s25  ;;  %p544_p3 = scmp.lt.s32.totalorder %s723_s12, %s723_s12 }
 0x361   :  { %p545_p4 = scmp.lt.s32.totalorder %s543_s26, %s539_s25 }
 0x363   :  { %p546_p5 = por %p545_p4, %p544_p3 }
 0x365   :  { %p547_p6 = pnand %p546_p5, %p540_p2 }
 0x367   :  { %550 = shalt.err (!%p547_p6)
}
 0x368   :  { %s551_s29 = scalar_lea.hbm %s783_s6, 16 }
 0x369   :  { %p552_p7 = scmp.ne.s32.totalorder %s783_s6, %s551_s29  ;;  %p555_p8 = scmp.lt.u32.totalorder %s551_s29, %s783_s6 }
 0x36b   :  { %p557_p9 = pnand %p555_p8, %p552_p7 }
 0x36d   :  { %560 = shalt.err (!%p557_p9)
}
 0x36e   :  { %390 = dma.vmem_to_hbm [thread:$0]  %s723_s12, 16, %s783_s6, [#allocation5]  }
 0x36f   :  { %s561_s9 = scalar_lea.vmem %s725_s14, 16  ;;  %s565_s2 = scalar_lea.vmem %s725_s14, 32 }
 0x370   :  { %p562_p10 = scmp.ne.s32.totalorder %s725_s14, %s561_s9  ;;  %p566_p11 = scmp.lt.s32.totalorder %s725_s14, %s725_s14 }
 0x371   :  { %p567_p12 = scmp.lt.s32.totalorder %s565_s2, %s561_s9 }
 0x373   :  { %p568_p13 = por %p567_p12, %p566_p11 }
 0x375   :  { %p569_p0 = pnand %p568_p13, %p562_p10 }
 0x377   :  { %572 = shalt.err (!%p569_p0)
}
 0x378   :  { %s573_s13 = scalar_lea.hbm %s785_s8, 16 }
 0x379   :  { %p574_p1 = scmp.ne.s32.totalorder %s785_s8, %s573_s13  ;;  %p577_p2 = scmp.lt.u32.totalorder %s573_s13, %s785_s8 }
 0x37b   :  { %p579_p3 = pnand %p577_p2, %p574_p1 }
 0x37d   :  { %582 = shalt.err (!%p579_p3)
}
 0x37e   :  { %410 = dma.vmem_to_hbm [thread:$0]  %s725_s14, 16, %s785_s8, [#allocation8]  }
 0x37f   :  { %585 = dma.done.wait [#allocation5], 16  }
 0x380   :  { %586 = vsyncadd [#allocation5], 4294967280 }
 0x381   :  { %587 = dma.done.wait [#allocation8], 32  }
 0x382   :  { %588 = vsyncadd [#allocation8], 4294967264 }
 0x383   :  { %420 = vsyncpa [#allocation4], 1 }
 0x384   :  { %421 = vsyncpa [#allocation5], 1 }
 0x385   :  { %422 = vsyncpa [#allocation8], 1 }

</bundles_post_ra>
